<compile_context>
chip_gen: v6e
topology: v6e:2x2x1
jax: 0.10.0
libtpu: 0.0.40
codegen_flags: <defaults>
</compile_context>

<pallas_src>
import functools
import math

import jax
import jax.numpy as jnp
import numpy as np
from jax.experimental import pallas as pl
from jax.experimental.pallas import tpu as pltpu

K_BERN = 10  # K of the Bernstein basis (module default)


# ----------------------------------------------------------------------------
# Fused Pallas kernel: all BernConv layers + output linear for G graphs
# ----------------------------------------------------------------------------
def bern_layer_kernel(coe_ref, x_ref, m1_ref, *rest, K, layers, H, hd, n):
    """Fused BernConvLayer forward for G graphs of the batch (one grid step).

    Ref order:
      coe_ref : SMEM (K+1,)        c_k = relu(coe[k]) * C(K,k)/2^K (precomputed)
      x_ref   : VMEM (G, n, H)     node features
      m1_ref  : VMEM (G, n, n)     L = I - D^-1/2 A D^-1/2  (per-graph block)
      rest    : W_l (din_l, hd), b_l (1, hd) for l=0..layers-1,
                Wo_stacked (2H, H), bo (1, H),  then  o_ref (G, n, H)
    """
    w_refs = rest[:2 * layers]
    wo_ref = rest[2 * layers]
    bo_ref = rest[2 * layers + 1]
    o_ref = rest[2 * layers + 2]

    G = x_ref.shape[0]
    m1 = m1_ref[...]                                            # (G, n, n) = L
    eye_b = jnp.broadcast_to(jnp.eye(n, dtype=jnp.float32), (G, n, n))

    # ---- Bernstein operator  P = sum_k c_k L^k (2I-L)^{K-k}  (matrix Horner).
    # M2 eliminated: M2 @ X = 2X - L @ X;  both L-applies fused into one dot.
    # First step done by hand (T_0 = I, P_0 = c_K I) -> saves a matmul.
    T = 2.0 * eye_b - m1                                        # (2I - L) @ I
    P = coe_ref[K] * m1 + coe_ref[K - 1] * T                    # L (c_K I) + c_{K-1} T
    for j in range(2, K + 1):
        pt = jnp.concatenate([P, T], axis=-1)                   # (G, n, 2n)
        m1pt = jnp.einsum('gij,gjk->gik', m1, pt,
                          preferred_element_type=jnp.float32)
        T = 2.0 * T - m1pt[..., n:]                             # (2I - L) @ T
        P = m1pt[..., :n] + coe_ref[K - j] * T                  # L @ P + c_{K-j} T

    # ---- BernConv layers (operator shared); features stay as values ----
    feats = x_ref[...]                                          # (G, n, H)
    for l in range(layers):
        din = H + hd * l
        W = w_refs[2 * l][...]                                  # (din, hd)
        b = w_refs[2 * l + 1][...]                              # (1, hd)
        h = (jnp.dot(feats.reshape(G * n, din), W,
                     preferred_element_type=jnp.float32) + b).reshape(G, n, hd)
        o = jnp.maximum(
            jnp.einsum('gij,gjd->gid', P, h,
                       preferred_element_type=jnp.float32), 0.0)  # relu(BernConv)
        feats = jnp.concatenate([feats, o], axis=-1)            # growing cache

    # ---- residual folded into the output matmul (Wo stacked on itself) ----
    out2d = (jnp.dot(feats.reshape(G * n, H + hd * layers), wo_ref[...],
                     preferred_element_type=jnp.float32) + bo_ref[...])
    o_ref[...] = out2d.reshape(G, n, H).astype(o_ref.dtype)


# ----------------------------------------------------------------------------
# Wrapper
# ----------------------------------------------------------------------------
def graph_operator_per_graph(adj):
    """Per-graph L = I - D^-1/2 A D^-1/2 from the >0 edge pattern.

    Exactly the per-graph diagonal blocks of the DiagCat'ed dense operator
    (off-diagonal blocks are zero, degrees only count in-graph edges).
    2I - L is reconstructed in-kernel as 2X - L X (never materialized).
    """
    A = (adj > 0).astype(jnp.float32)                      # (B, n, n)
    deg = A.sum(axis=-1)                                   # (B, n)
    dinv = jnp.where(deg > 0, 1.0 / jnp.sqrt(deg), 0.0)
    A_hat = dinv[:, :, None] * A * dinv[:, None, :]
    I = jnp.eye(adj.shape[-1], dtype=jnp.float32)[None]
    return I - A_hat


def _pick_graphs_per_step(B, target=8):
    """Largest divisor of B <= target, preferring an even grid length (v7x 2 TCs)."""
    divs = [g for g in range(1, min(B, target) + 1) if B % g == 0]
    even_grid = [g for g in divs if (B // g) % 2 == 0]
    return max(even_grid) if even_grid else max(divs)


def _vmem_limit_bytes(G, n, H, hd, layers, w_inputs):
    """Exact-ish resident set: double-buffered tiles + weights + kernel temps."""
    f32 = 4
    weights = sum(int(np.prod(np.shape(w))) for w in w_inputs)
    in_tiles = G * n * (H + n)                  # x + L
    out_tiles = G * n * H
    temps = G * n * (6 * n + 3 * (H + hd * layers))   # Horner state + feature concat
    need = f32 * (2 * in_tiles + 2 * out_tiles + 2 * weights + temps)
    # +25% headroom; 8 MiB floor (don't starve surrounding fusions for tiny
    # problems); 56 MiB cap keeps it safe on v7x (64 MiB physical / TC).
    return int(min(max(need * 5 // 4 + (2 << 20), 8 << 20), 56 << 20))


def bern_conv_layer_forward(adj, x_in, params, layers=4, K=K_BERN,
                            graphs_per_step=None):
    B, n, H = x_in.shape
    assert H % layers == 0, "hidden_size must be divisible by layers"
    hd = H // layers

    M1 = graph_operator_per_graph(adj)                     # (B, n, n)

    # c_k = relu(coe[k]) * C(K,k)/2^K, precomputed once (SMEM vector).
    combs = jnp.asarray([math.comb(K, i) / float(2 ** K) for i in range(K + 1)],
                        jnp.float32)
    coe_scaled = jnp.maximum(params["coe"], 0.0) * combs

    G = _pick_graphs_per_step(B) if graphs_per_step is None else graphs_per_step
    assert B % G == 0

    w_inputs, w_specs = [], []
    for l in range(layers):
        din = H + hd * l
        w_inputs += [params[f"W{l}"], params[f"b{l}"].reshape(1, hd)]
        w_specs += [pl.BlockSpec((din, hd), lambda i: (0, 0)),
                    pl.BlockSpec((1, hd), lambda i: (0, 0))]
    wo_stacked = jnp.concatenate([params["Wo"], params["Wo"]], axis=0)  # (2H, H)
    w_inputs += [wo_stacked, params["bo"].reshape(1, H)]
    w_specs += [pl.BlockSpec((H + hd * layers, H), lambda i: (0, 0)),
                pl.BlockSpec((1, H), lambda i: (0, 0))]

    kernel = functools.partial(bern_layer_kernel, K=K, layers=layers,
                               H=H, hd=hd, n=n)

    in_specs = [
        pl.BlockSpec(memory_space=pltpu.MemorySpace.SMEM),          # coe_scaled
        pl.BlockSpec((G, n, H), lambda i: (i, 0, 0)),               # x
        pl.BlockSpec((G, n, n), lambda i: (i, 0, 0)),               # L
        *w_specs,
    ]
    out_spec = pl.BlockSpec((G, n, H), lambda i: (i, 0, 0))

    out = pl.pallas_call(
        kernel,
        out_shape=jax.ShapeDtypeStruct((B, n, H), jnp.float32),
        grid=(B // G,),
        in_specs=in_specs,
        out_specs=out_spec,
        compiler_params=pltpu.CompilerParams(
            dimension_semantics=("parallel",),   # graph blocks shard across TCs
            vmem_limit_bytes=_vmem_limit_bytes(G, n, H, hd, layers, w_inputs)),
    )(coe_scaled, x_in, M1, *w_inputs)
    return out                                   # (B, n, H), equal-size graphs


# ----------------------------------------------------------------------------
# Pure-JAX reference (dense block-diagonal operators, non-Horner formulation)
# ----------------------------------------------------------------------------
def _diag_cat(adj):
    B, n, _ = adj.shape
    out = jnp.zeros((B * n, B * n), adj.dtype)
    for b in range(B):
        out = out.at[b * n:(b + 1) * n, b * n:(b + 1) * n].set(adj[b])
    return out


def _graph_operators_dense(adj):
    A = (_diag_cat(adj) > 0).astype(jnp.float32)
    deg = A.sum(axis=-1)
    dinv = jnp.where(deg > 0, 1.0 / jnp.sqrt(deg), 0.0)
    A_hat = dinv[:, None] * A * dinv[None, :]
    I = jnp.eye(A.shape[0], dtype=jnp.float32)
    return I - A_hat, I + A_hat


def _bern_conv_ref(coe, x, W, b, M1, M2, K=K_BERN):
    h = x @ W + b
    tmp = [h]
    for _ in range(K):
        tmp.append(M2 @ tmp[-1])
    combs = [math.comb(K, i) / float(2 ** K) for i in range(K + 1)]
    out = jnp.maximum(coe[0], 0.0) * combs[0] * tmp[K]
    for i in range(K):
        y = tmp[K - i - 1]
        for _ in range(i + 1):
            y = M1 @ y
        out = out + jnp.maximum(coe[i + 1], 0.0) * combs[i + 1] * y
    return jnp.maximum(out, 0.0)


def forward_ref(adj, x_in, params, layers=4, K=K_BERN):
    B, n, H = x_in.shape
    M1, M2 = _graph_operators_dense(adj)
    x_cat = x_in.reshape(B * n, H)
    cache, outs, cur = [x_cat], [], x_cat
    for l in range(layers):
        o = _bern_conv_ref(params["coe"], cur, params[f"W{l}"],
                           params[f"b{l}"], M1, M2, K=K)
        outs.append(o)
        cache.append(o)
        cur = jnp.concatenate(cache, axis=-1)
    bern_outputs = jnp.concatenate(outs, axis=-1)
    out = (bern_outputs + x_cat) @ params["Wo"] + params["bo"]
    return out.reshape(B, n, H)


# ----------------------------------------------------------------------------
if __name__ == "__main__":
    B, n = 2, 8
    hidden_size, layers = 32, 4
    head_dim = hidden_size // layers  # 8

    key = jax.random.PRNGKey(0)
    k_adj, k_x, k_coe, *k_w = jax.random.split(key, 3 + 2 * (layers + 1))

    # symmetric adjacency with self-loops (dependency-graph style)
    a = jax.random.bernoulli(k_adj, 0.3, (B, n, n)).astype(jnp.float32)
    adj = jnp.maximum(a, jnp.transpose(a, (0, 2, 1)))
    adj = jnp.maximum(adj, jnp.eye(n, dtype=jnp.float32)[None])

    x_in = jax.random.normal(k_x, (B, n, hidden_size), dtype=jnp.float32)

    # parameters (shapes from __init__); torch Linear weight (out, in) is stored
    # here as (in, out) so the kernel does x @ W + b.  coe is perturbed away
    # from the reset_parameters fill(1) so the Bernstein polynomial (and the
    # relu(coe) clamp) is actually exercised numerically.
    params = {"coe": jax.random.uniform(k_coe, (K_BERN + 1,), jnp.float32,
                                        -0.5, 1.5)}
    for l in range(layers):
        din = hidden_size + head_dim * l
        params[f"W{l}"] = 0.1 * jax.random.normal(k_w[2 * l], (din, head_dim),
                                                  dtype=jnp.float32)
        params[f"b{l}"] = 0.1 * jax.random.normal(k_w[2 * l + 1], (head_dim,),
                                                  dtype=jnp.float32)
    params["Wo"] = 0.1 * jax.random.normal(k_w[2 * layers],
                                           (hidden_size, hidden_size),
                                           dtype=jnp.float32)
    params["bo"] = 0.1 * jax.random.normal(k_w[2 * layers + 1], (hidden_size,),
                                           dtype=jnp.float32)
    # NOTE: self.fc2 (Linear(360,1)) is unused in forward and not materialized.

    out = bern_conv_layer_forward(adj, x_in, params, layers=layers)
    out = jax.block_until_ready(out)

    ref = forward_ref(adj, x_in, params, layers=layers)
    # Horner / precomputed-operator re-association changes fp32 rounding vs the
    # 65-matmul reference.
    np.testing.assert_allclose(np.asarray(out), np.asarray(ref),
                               rtol=1e-3, atol=1e-3)
    print("KERNEL_OK")
</pallas_src>

<mosaic_0001>
module attributes {stable_mosaic.version = 11 : i64} {
  func.func @bern_layer_kernel(%arg0: i32, %arg1: memref<11xf32, #tpu.memory_space<smem>>, %arg2: memref<1x8x32xf32, #tpu.memory_space<vmem>>, %arg3: memref<1x8x8xf32, #tpu.memory_space<vmem>>, %arg4: memref<32x8xf32, #tpu.memory_space<vmem>>, %arg5: memref<1x8xf32, #tpu.memory_space<vmem>>, %arg6: memref<40x8xf32, #tpu.memory_space<vmem>>, %arg7: memref<1x8xf32, #tpu.memory_space<vmem>>, %arg8: memref<48x8xf32, #tpu.memory_space<vmem>>, %arg9: memref<1x8xf32, #tpu.memory_space<vmem>>, %arg10: memref<56x8xf32, #tpu.memory_space<vmem>>, %arg11: memref<1x8xf32, #tpu.memory_space<vmem>>, %arg12: memref<64x32xf32, #tpu.memory_space<vmem>>, %arg13: memref<1x32xf32, #tpu.memory_space<vmem>>, %arg14: memref<1x8x32xf32, #tpu.memory_space<vmem>>) attributes {dimension_semantics = [#tpu.dimension_semantics<parallel>], iteration_bounds = array<i64: 2>, scalar_prefetch = 0 : i64, scratch_operands = 0 : i64, tpu.core_type = #tpu.core_type<tc>, window_params = [{transform_indices = @transform_0, window_bounds = array<i64: 11>}, {transform_indices = @transform_1, window_bounds = array<i64: 1, 8, 32>}, {transform_indices = @transform_2, window_bounds = array<i64: 1, 8, 8>}, {pipeline_mode = #tpu.pipeline_mode<synchronous>, transform_indices = @transform_3, window_bounds = array<i64: 32, 8>}, {pipeline_mode = #tpu.pipeline_mode<synchronous>, transform_indices = @transform_4, window_bounds = array<i64: 1, 8>}, {pipeline_mode = #tpu.pipeline_mode<synchronous>, transform_indices = @transform_5, window_bounds = array<i64: 40, 8>}, {pipeline_mode = #tpu.pipeline_mode<synchronous>, transform_indices = @transform_6, window_bounds = array<i64: 1, 8>}, {pipeline_mode = #tpu.pipeline_mode<synchronous>, transform_indices = @transform_7, window_bounds = array<i64: 48, 8>}, {pipeline_mode = #tpu.pipeline_mode<synchronous>, transform_indices = @transform_8, window_bounds = array<i64: 1, 8>}, {pipeline_mode = #tpu.pipeline_mode<synchronous>, transform_indices = @transform_9, window_bounds = array<i64: 56, 8>}, {pipeline_mode = #tpu.pipeline_mode<synchronous>, transform_indices = @transform_10, window_bounds = array<i64: 1, 8>}, {pipeline_mode = #tpu.pipeline_mode<synchronous>, transform_indices = @transform_11, window_bounds = array<i64: 64, 32>}, {pipeline_mode = #tpu.pipeline_mode<synchronous>, transform_indices = @transform_12, window_bounds = array<i64: 1, 32>}, {transform_indices = @transform_13, window_bounds = array<i64: 1, 8, 32>}]} {
    %c0 = arith.constant 0 : index
    %c0_0 = arith.constant 0 : index
    %c0_1 = arith.constant 0 : index
    %0 = vector.load %arg3[%c0, %c0_0, %c0_1] : memref<1x8x8xf32, #tpu.memory_space<vmem>>, vector<1x8x8xf32>
    %1 = tpu.iota {dimensions = array<i32: 0>} : vector<8x8xi32>
    %2 = tpu.iota {dimensions = array<i32: 1>} : vector<8x8xi32>
    %c0_i32 = arith.constant 0 : i32
    %3 = vector.broadcast %c0_i32 : i32 to vector<8x8xi32>
    %4 = arith.addi %1, %3 : vector<8x8xi32>
    %5 = arith.cmpi eq, %4, %2 : vector<8x8xi32>
    %6 = arith.extui %5 : vector<8x8xi1> to vector<8x8xi32>
    %7 = arith.sitofp %6 : vector<8x8xi32> to vector<8x8xf32>
    %8 = vector.shape_cast %7 : vector<8x8xf32> to vector<1x8x8xf32>
    %cst = arith.constant 2.000000e+00 : f32
    %9 = vector.broadcast %cst : f32 to vector<1x8x8xf32>
    %10 = arith.mulf %9, %8 : vector<1x8x8xf32>
    %11 = arith.subf %10, %0 : vector<1x8x8xf32>
    %c10 = arith.constant 10 : index
    %12 = memref.load %arg1[%c10] : memref<11xf32, #tpu.memory_space<smem>>
    %13 = vector.broadcast %12 : f32 to vector<1x8x8xf32>
    %14 = arith.mulf %13, %0 : vector<1x8x8xf32>
    %c9 = arith.constant 9 : index
    %15 = memref.load %arg1[%c9] : memref<11xf32, #tpu.memory_space<smem>>
    %16 = vector.broadcast %15 : f32 to vector<1x8x8xf32>
    %17 = arith.mulf %16, %11 : vector<1x8x8xf32>
    %18 = arith.addf %14, %17 : vector<1x8x8xf32>
    %19 = tpu.concatenate %18, %11 in 2 : vector<1x8x8xf32>, vector<1x8x8xf32> -> vector<1x8x16xf32>
    "tpu.trace_start"() <{level = 10 : i32, message = "gij,gjk->gik"}> : () -> ()
    %cst_2 = arith.constant dense<0.000000e+00> : vector<1x8x16xf32>
    %20 = tpu.matmul %0, %19, %cst_2 {dimension_numbers = #tpu.dot_dimension_numbers<[2], [1], [1], [2], [0, 0, 0, 1, 1, 2], [0], [0]>} : vector<1x8x8xf32>, vector<1x8x16xf32>, vector<1x8x16xf32> -> vector<1x8x16xf32>
    "tpu.trace_stop"() : () -> ()
    %cst_3 = arith.constant 2.000000e+00 : f32
    %21 = vector.broadcast %cst_3 : f32 to vector<1x8x8xf32>
    %22 = arith.mulf %21, %11 : vector<1x8x8xf32>
    %23 = vector.extract_strided_slice %20 {offsets = [0, 0, 8], sizes = [1, 8, 8], strides = [1, 1, 1]} : vector<1x8x16xf32> to vector<1x8x8xf32>
    %24 = arith.subf %22, %23 : vector<1x8x8xf32>
    %25 = vector.extract_strided_slice %20 {offsets = [0, 0, 0], sizes = [1, 8, 8], strides = [1, 1, 1]} : vector<1x8x16xf32> to vector<1x8x8xf32>
    %c8 = arith.constant 8 : index
    %26 = memref.load %arg1[%c8] : memref<11xf32, #tpu.memory_space<smem>>
    %27 = vector.broadcast %26 : f32 to vector<1x8x8xf32>
    %28 = arith.mulf %27, %24 : vector<1x8x8xf32>
    %29 = arith.addf %25, %28 : vector<1x8x8xf32>
    %30 = tpu.concatenate %29, %24 in 2 : vector<1x8x8xf32>, vector<1x8x8xf32> -> vector<1x8x16xf32>
    "tpu.trace_start"() <{level = 10 : i32, message = "gij,gjk->gik"}> : () -> ()
    %cst_4 = arith.constant dense<0.000000e+00> : vector<1x8x16xf32>
    %31 = tpu.matmul %0, %30, %cst_4 {dimension_numbers = #tpu.dot_dimension_numbers<[2], [1], [1], [2], [0, 0, 0, 1, 1, 2], [0], [0]>} : vector<1x8x8xf32>, vector<1x8x16xf32>, vector<1x8x16xf32> -> vector<1x8x16xf32>
    "tpu.trace_stop"() : () -> ()
    %cst_5 = arith.constant 2.000000e+00 : f32
    %32 = vector.broadcast %cst_5 : f32 to vector<1x8x8xf32>
    %33 = arith.mulf %32, %24 : vector<1x8x8xf32>
    %34 = vector.extract_strided_slice %31 {offsets = [0, 0, 8], sizes = [1, 8, 8], strides = [1, 1, 1]} : vector<1x8x16xf32> to vector<1x8x8xf32>
    %35 = arith.subf %33, %34 : vector<1x8x8xf32>
    %36 = vector.extract_strided_slice %31 {offsets = [0, 0, 0], sizes = [1, 8, 8], strides = [1, 1, 1]} : vector<1x8x16xf32> to vector<1x8x8xf32>
    %c7 = arith.constant 7 : index
    %37 = memref.load %arg1[%c7] : memref<11xf32, #tpu.memory_space<smem>>
    %38 = vector.broadcast %37 : f32 to vector<1x8x8xf32>
    %39 = arith.mulf %38, %35 : vector<1x8x8xf32>
    %40 = arith.addf %36, %39 : vector<1x8x8xf32>
    %41 = tpu.concatenate %40, %35 in 2 : vector<1x8x8xf32>, vector<1x8x8xf32> -> vector<1x8x16xf32>
    "tpu.trace_start"() <{level = 10 : i32, message = "gij,gjk->gik"}> : () -> ()
    %cst_6 = arith.constant dense<0.000000e+00> : vector<1x8x16xf32>
    %42 = tpu.matmul %0, %41, %cst_6 {dimension_numbers = #tpu.dot_dimension_numbers<[2], [1], [1], [2], [0, 0, 0, 1, 1, 2], [0], [0]>} : vector<1x8x8xf32>, vector<1x8x16xf32>, vector<1x8x16xf32> -> vector<1x8x16xf32>
    "tpu.trace_stop"() : () -> ()
    %cst_7 = arith.constant 2.000000e+00 : f32
    %43 = vector.broadcast %cst_7 : f32 to vector<1x8x8xf32>
    %44 = arith.mulf %43, %35 : vector<1x8x8xf32>
    %45 = vector.extract_strided_slice %42 {offsets = [0, 0, 8], sizes = [1, 8, 8], strides = [1, 1, 1]} : vector<1x8x16xf32> to vector<1x8x8xf32>
    %46 = arith.subf %44, %45 : vector<1x8x8xf32>
    %47 = vector.extract_strided_slice %42 {offsets = [0, 0, 0], sizes = [1, 8, 8], strides = [1, 1, 1]} : vector<1x8x16xf32> to vector<1x8x8xf32>
    %c6 = arith.constant 6 : index
    %48 = memref.load %arg1[%c6] : memref<11xf32, #tpu.memory_space<smem>>
    %49 = vector.broadcast %48 : f32 to vector<1x8x8xf32>
    %50 = arith.mulf %49, %46 : vector<1x8x8xf32>
    %51 = arith.addf %47, %50 : vector<1x8x8xf32>
    %52 = tpu.concatenate %51, %46 in 2 : vector<1x8x8xf32>, vector<1x8x8xf32> -> vector<1x8x16xf32>
    "tpu.trace_start"() <{level = 10 : i32, message = "gij,gjk->gik"}> : () -> ()
    %cst_8 = arith.constant dense<0.000000e+00> : vector<1x8x16xf32>
    %53 = tpu.matmul %0, %52, %cst_8 {dimension_numbers = #tpu.dot_dimension_numbers<[2], [1], [1], [2], [0, 0, 0, 1, 1, 2], [0], [0]>} : vector<1x8x8xf32>, vector<1x8x16xf32>, vector<1x8x16xf32> -> vector<1x8x16xf32>
    "tpu.trace_stop"() : () -> ()
    %cst_9 = arith.constant 2.000000e+00 : f32
    %54 = vector.broadcast %cst_9 : f32 to vector<1x8x8xf32>
    %55 = arith.mulf %54, %46 : vector<1x8x8xf32>
    %56 = vector.extract_strided_slice %53 {offsets = [0, 0, 8], sizes = [1, 8, 8], strides = [1, 1, 1]} : vector<1x8x16xf32> to vector<1x8x8xf32>
    %57 = arith.subf %55, %56 : vector<1x8x8xf32>
    %58 = vector.extract_strided_slice %53 {offsets = [0, 0, 0], sizes = [1, 8, 8], strides = [1, 1, 1]} : vector<1x8x16xf32> to vector<1x8x8xf32>
    %c5 = arith.constant 5 : index
    %59 = memref.load %arg1[%c5] : memref<11xf32, #tpu.memory_space<smem>>
    %60 = vector.broadcast %59 : f32 to vector<1x8x8xf32>
    %61 = arith.mulf %60, %57 : vector<1x8x8xf32>
    %62 = arith.addf %58, %61 : vector<1x8x8xf32>
    %63 = tpu.concatenate %62, %57 in 2 : vector<1x8x8xf32>, vector<1x8x8xf32> -> vector<1x8x16xf32>
    "tpu.trace_start"() <{level = 10 : i32, message = "gij,gjk->gik"}> : () -> ()
    %cst_10 = arith.constant dense<0.000000e+00> : vector<1x8x16xf32>
    %64 = tpu.matmul %0, %63, %cst_10 {dimension_numbers = #tpu.dot_dimension_numbers<[2], [1], [1], [2], [0, 0, 0, 1, 1, 2], [0], [0]>} : vector<1x8x8xf32>, vector<1x8x16xf32>, vector<1x8x16xf32> -> vector<1x8x16xf32>
    "tpu.trace_stop"() : () -> ()
    %cst_11 = arith.constant 2.000000e+00 : f32
    %65 = vector.broadcast %cst_11 : f32 to vector<1x8x8xf32>
    %66 = arith.mulf %65, %57 : vector<1x8x8xf32>
    %67 = vector.extract_strided_slice %64 {offsets = [0, 0, 8], sizes = [1, 8, 8], strides = [1, 1, 1]} : vector<1x8x16xf32> to vector<1x8x8xf32>
    %68 = arith.subf %66, %67 : vector<1x8x8xf32>
    %69 = vector.extract_strided_slice %64 {offsets = [0, 0, 0], sizes = [1, 8, 8], strides = [1, 1, 1]} : vector<1x8x16xf32> to vector<1x8x8xf32>
    %c4 = arith.constant 4 : index
    %70 = memref.load %arg1[%c4] : memref<11xf32, #tpu.memory_space<smem>>
    %71 = vector.broadcast %70 : f32 to vector<1x8x8xf32>
    %72 = arith.mulf %71, %68 : vector<1x8x8xf32>
    %73 = arith.addf %69, %72 : vector<1x8x8xf32>
    %74 = tpu.concatenate %73, %68 in 2 : vector<1x8x8xf32>, vector<1x8x8xf32> -> vector<1x8x16xf32>
    "tpu.trace_start"() <{level = 10 : i32, message = "gij,gjk->gik"}> : () -> ()
    %cst_12 = arith.constant dense<0.000000e+00> : vector<1x8x16xf32>
    %75 = tpu.matmul %0, %74, %cst_12 {dimension_numbers = #tpu.dot_dimension_numbers<[2], [1], [1], [2], [0, 0, 0, 1, 1, 2], [0], [0]>} : vector<1x8x8xf32>, vector<1x8x16xf32>, vector<1x8x16xf32> -> vector<1x8x16xf32>
    "tpu.trace_stop"() : () -> ()
    %cst_13 = arith.constant 2.000000e+00 : f32
    %76 = vector.broadcast %cst_13 : f32 to vector<1x8x8xf32>
    %77 = arith.mulf %76, %68 : vector<1x8x8xf32>
    %78 = vector.extract_strided_slice %75 {offsets = [0, 0, 8], sizes = [1, 8, 8], strides = [1, 1, 1]} : vector<1x8x16xf32> to vector<1x8x8xf32>
    %79 = arith.subf %77, %78 : vector<1x8x8xf32>
    %80 = vector.extract_strided_slice %75 {offsets = [0, 0, 0], sizes = [1, 8, 8], strides = [1, 1, 1]} : vector<1x8x16xf32> to vector<1x8x8xf32>
    %c3 = arith.constant 3 : index
    %81 = memref.load %arg1[%c3] : memref<11xf32, #tpu.memory_space<smem>>
    %82 = vector.broadcast %81 : f32 to vector<1x8x8xf32>
    %83 = arith.mulf %82, %79 : vector<1x8x8xf32>
    %84 = arith.addf %80, %83 : vector<1x8x8xf32>
    %85 = tpu.concatenate %84, %79 in 2 : vector<1x8x8xf32>, vector<1x8x8xf32> -> vector<1x8x16xf32>
    "tpu.trace_start"() <{level = 10 : i32, message = "gij,gjk->gik"}> : () -> ()
    %cst_14 = arith.constant dense<0.000000e+00> : vector<1x8x16xf32>
    %86 = tpu.matmul %0, %85, %cst_14 {dimension_numbers = #tpu.dot_dimension_numbers<[2], [1], [1], [2], [0, 0, 0, 1, 1, 2], [0], [0]>} : vector<1x8x8xf32>, vector<1x8x16xf32>, vector<1x8x16xf32> -> vector<1x8x16xf32>
    "tpu.trace_stop"() : () -> ()
    %cst_15 = arith.constant 2.000000e+00 : f32
    %87 = vector.broadcast %cst_15 : f32 to vector<1x8x8xf32>
    %88 = arith.mulf %87, %79 : vector<1x8x8xf32>
    %89 = vector.extract_strided_slice %86 {offsets = [0, 0, 8], sizes = [1, 8, 8], strides = [1, 1, 1]} : vector<1x8x16xf32> to vector<1x8x8xf32>
    %90 = arith.subf %88, %89 : vector<1x8x8xf32>
    %91 = vector.extract_strided_slice %86 {offsets = [0, 0, 0], sizes = [1, 8, 8], strides = [1, 1, 1]} : vector<1x8x16xf32> to vector<1x8x8xf32>
    %c2 = arith.constant 2 : index
    %92 = memref.load %arg1[%c2] : memref<11xf32, #tpu.memory_space<smem>>
    %93 = vector.broadcast %92 : f32 to vector<1x8x8xf32>
    %94 = arith.mulf %93, %90 : vector<1x8x8xf32>
    %95 = arith.addf %91, %94 : vector<1x8x8xf32>
    %96 = tpu.concatenate %95, %90 in 2 : vector<1x8x8xf32>, vector<1x8x8xf32> -> vector<1x8x16xf32>
    "tpu.trace_start"() <{level = 10 : i32, message = "gij,gjk->gik"}> : () -> ()
    %cst_16 = arith.constant dense<0.000000e+00> : vector<1x8x16xf32>
    %97 = tpu.matmul %0, %96, %cst_16 {dimension_numbers = #tpu.dot_dimension_numbers<[2], [1], [1], [2], [0, 0, 0, 1, 1, 2], [0], [0]>} : vector<1x8x8xf32>, vector<1x8x16xf32>, vector<1x8x16xf32> -> vector<1x8x16xf32>
    "tpu.trace_stop"() : () -> ()
    %cst_17 = arith.constant 2.000000e+00 : f32
    %98 = vector.broadcast %cst_17 : f32 to vector<1x8x8xf32>
    %99 = arith.mulf %98, %90 : vector<1x8x8xf32>
    %100 = vector.extract_strided_slice %97 {offsets = [0, 0, 8], sizes = [1, 8, 8], strides = [1, 1, 1]} : vector<1x8x16xf32> to vector<1x8x8xf32>
    %101 = arith.subf %99, %100 : vector<1x8x8xf32>
    %102 = vector.extract_strided_slice %97 {offsets = [0, 0, 0], sizes = [1, 8, 8], strides = [1, 1, 1]} : vector<1x8x16xf32> to vector<1x8x8xf32>
    %c1 = arith.constant 1 : index
    %103 = memref.load %arg1[%c1] : memref<11xf32, #tpu.memory_space<smem>>
    %104 = vector.broadcast %103 : f32 to vector<1x8x8xf32>
    %105 = arith.mulf %104, %101 : vector<1x8x8xf32>
    %106 = arith.addf %102, %105 : vector<1x8x8xf32>
    %107 = tpu.concatenate %106, %101 in 2 : vector<1x8x8xf32>, vector<1x8x8xf32> -> vector<1x8x16xf32>
    "tpu.trace_start"() <{level = 10 : i32, message = "gij,gjk->gik"}> : () -> ()
    %cst_18 = arith.constant dense<0.000000e+00> : vector<1x8x16xf32>
    %108 = tpu.matmul %0, %107, %cst_18 {dimension_numbers = #tpu.dot_dimension_numbers<[2], [1], [1], [2], [0, 0, 0, 1, 1, 2], [0], [0]>} : vector<1x8x8xf32>, vector<1x8x16xf32>, vector<1x8x16xf32> -> vector<1x8x16xf32>
    "tpu.trace_stop"() : () -> ()
    %cst_19 = arith.constant 2.000000e+00 : f32
    %109 = vector.broadcast %cst_19 : f32 to vector<1x8x8xf32>
    %110 = arith.mulf %109, %101 : vector<1x8x8xf32>
    %111 = vector.extract_strided_slice %108 {offsets = [0, 0, 8], sizes = [1, 8, 8], strides = [1, 1, 1]} : vector<1x8x16xf32> to vector<1x8x8xf32>
    %112 = arith.subf %110, %111 : vector<1x8x8xf32>
    %113 = vector.extract_strided_slice %108 {offsets = [0, 0, 0], sizes = [1, 8, 8], strides = [1, 1, 1]} : vector<1x8x16xf32> to vector<1x8x8xf32>
    %c0_20 = arith.constant 0 : index
    %114 = memref.load %arg1[%c0_20] : memref<11xf32, #tpu.memory_space<smem>>
    %115 = vector.broadcast %114 : f32 to vector<1x8x8xf32>
    %116 = arith.mulf %115, %112 : vector<1x8x8xf32>
    %117 = arith.addf %113, %116 : vector<1x8x8xf32>
    %c0_21 = arith.constant 0 : index
    %c0_22 = arith.constant 0 : index
    %c0_23 = arith.constant 0 : index
    %118 = vector.load %arg2[%c0_21, %c0_22, %c0_23] : memref<1x8x32xf32, #tpu.memory_space<vmem>>, vector<1x8x32xf32>
    %c0_24 = arith.constant 0 : index
    %c0_25 = arith.constant 0 : index
    %119 = vector.load %arg4[%c0_24, %c0_25] : memref<32x8xf32, #tpu.memory_space<vmem>>, vector<32x8xf32>
    %c0_26 = arith.constant 0 : index
    %c0_27 = arith.constant 0 : index
    %120 = vector.load %arg5[%c0_26, %c0_27] : memref<1x8xf32, #tpu.memory_space<vmem>>, vector<1x8xf32>
    %121 = vector.shape_cast %118 : vector<1x8x32xf32> to vector<8x32xf32>
    %cst_28 = arith.constant dense<0.000000e+00> : vector<8x8xf32>
    %122 = tpu.matmul %121, %119, %cst_28 {dimension_numbers = #tpu.dot_dimension_numbers<[1], [0], [0], [1], [0, 0, 1, 1], [], []>} : vector<8x32xf32>, vector<32x8xf32>, vector<8x8xf32> -> vector<8x8xf32>
    %123 = vector.broadcast %120 : vector<1x8xf32> to vector<8x8xf32>
    %124 = arith.addf %122, %123 : vector<8x8xf32>
    %125 = vector.shape_cast %124 : vector<8x8xf32> to vector<1x8x8xf32>
    "tpu.trace_start"() <{level = 10 : i32, message = "gij,gjd->gid"}> : () -> ()
    %cst_29 = arith.constant dense<0.000000e+00> : vector<1x8x8xf32>
    %126 = tpu.matmul %117, %125, %cst_29 {dimension_numbers = #tpu.dot_dimension_numbers<[2], [1], [1], [2], [0, 0, 0, 1, 1, 2], [0], [0]>} : vector<1x8x8xf32>, vector<1x8x8xf32>, vector<1x8x8xf32> -> vector<1x8x8xf32>
    "tpu.trace_stop"() : () -> ()
    %cst_30 = arith.constant 0.000000e+00 : f32
    %127 = vector.broadcast %cst_30 : f32 to vector<1x8x8xf32>
    %128 = arith.maximumf %126, %127 : vector<1x8x8xf32>
    %129 = tpu.concatenate %118, %128 in 2 : vector<1x8x32xf32>, vector<1x8x8xf32> -> vector<1x8x40xf32>
    %c0_31 = arith.constant 0 : index
    %c0_32 = arith.constant 0 : index
    %130 = vector.load %arg6[%c0_31, %c0_32] : memref<40x8xf32, #tpu.memory_space<vmem>>, vector<40x8xf32>
    %c0_33 = arith.constant 0 : index
    %c0_34 = arith.constant 0 : index
    %131 = vector.load %arg7[%c0_33, %c0_34] : memref<1x8xf32, #tpu.memory_space<vmem>>, vector<1x8xf32>
    %132 = vector.shape_cast %129 : vector<1x8x40xf32> to vector<8x40xf32>
    %cst_35 = arith.constant dense<0.000000e+00> : vector<8x8xf32>
    %133 = tpu.matmul %132, %130, %cst_35 {dimension_numbers = #tpu.dot_dimension_numbers<[1], [0], [0], [1], [0, 0, 1, 1], [], []>} : vector<8x40xf32>, vector<40x8xf32>, vector<8x8xf32> -> vector<8x8xf32>
    %134 = vector.broadcast %131 : vector<1x8xf32> to vector<8x8xf32>
    %135 = arith.addf %133, %134 : vector<8x8xf32>
    %136 = vector.shape_cast %135 : vector<8x8xf32> to vector<1x8x8xf32>
    "tpu.trace_start"() <{level = 10 : i32, message = "gij,gjd->gid"}> : () -> ()
    %cst_36 = arith.constant dense<0.000000e+00> : vector<1x8x8xf32>
    %137 = tpu.matmul %117, %136, %cst_36 {dimension_numbers = #tpu.dot_dimension_numbers<[2], [1], [1], [2], [0, 0, 0, 1, 1, 2], [0], [0]>} : vector<1x8x8xf32>, vector<1x8x8xf32>, vector<1x8x8xf32> -> vector<1x8x8xf32>
    "tpu.trace_stop"() : () -> ()
    %cst_37 = arith.constant 0.000000e+00 : f32
    %138 = vector.broadcast %cst_37 : f32 to vector<1x8x8xf32>
    %139 = arith.maximumf %137, %138 : vector<1x8x8xf32>
    %140 = tpu.concatenate %129, %139 in 2 : vector<1x8x40xf32>, vector<1x8x8xf32> -> vector<1x8x48xf32>
    %c0_38 = arith.constant 0 : index
    %c0_39 = arith.constant 0 : index
    %141 = vector.load %arg8[%c0_38, %c0_39] : memref<48x8xf32, #tpu.memory_space<vmem>>, vector<48x8xf32>
    %c0_40 = arith.constant 0 : index
    %c0_41 = arith.constant 0 : index
    %142 = vector.load %arg9[%c0_40, %c0_41] : memref<1x8xf32, #tpu.memory_space<vmem>>, vector<1x8xf32>
    %143 = vector.shape_cast %140 : vector<1x8x48xf32> to vector<8x48xf32>
    %cst_42 = arith.constant dense<0.000000e+00> : vector<8x8xf32>
    %144 = tpu.matmul %143, %141, %cst_42 {dimension_numbers = #tpu.dot_dimension_numbers<[1], [0], [0], [1], [0, 0, 1, 1], [], []>} : vector<8x48xf32>, vector<48x8xf32>, vector<8x8xf32> -> vector<8x8xf32>
    %145 = vector.broadcast %142 : vector<1x8xf32> to vector<8x8xf32>
    %146 = arith.addf %144, %145 : vector<8x8xf32>
    %147 = vector.shape_cast %146 : vector<8x8xf32> to vector<1x8x8xf32>
    "tpu.trace_start"() <{level = 10 : i32, message = "gij,gjd->gid"}> : () -> ()
    %cst_43 = arith.constant dense<0.000000e+00> : vector<1x8x8xf32>
    %148 = tpu.matmul %117, %147, %cst_43 {dimension_numbers = #tpu.dot_dimension_numbers<[2], [1], [1], [2], [0, 0, 0, 1, 1, 2], [0], [0]>} : vector<1x8x8xf32>, vector<1x8x8xf32>, vector<1x8x8xf32> -> vector<1x8x8xf32>
    "tpu.trace_stop"() : () -> ()
    %cst_44 = arith.constant 0.000000e+00 : f32
    %149 = vector.broadcast %cst_44 : f32 to vector<1x8x8xf32>
    %150 = arith.maximumf %148, %149 : vector<1x8x8xf32>
    %151 = tpu.concatenate %140, %150 in 2 : vector<1x8x48xf32>, vector<1x8x8xf32> -> vector<1x8x56xf32>
    %c0_45 = arith.constant 0 : index
    %c0_46 = arith.constant 0 : index
    %152 = vector.load %arg10[%c0_45, %c0_46] : memref<56x8xf32, #tpu.memory_space<vmem>>, vector<56x8xf32>
    %c0_47 = arith.constant 0 : index
    %c0_48 = arith.constant 0 : index
    %153 = vector.load %arg11[%c0_47, %c0_48] : memref<1x8xf32, #tpu.memory_space<vmem>>, vector<1x8xf32>
    %154 = vector.shape_cast %151 : vector<1x8x56xf32> to vector<8x56xf32>
    %cst_49 = arith.constant dense<0.000000e+00> : vector<8x8xf32>
    %155 = tpu.matmul %154, %152, %cst_49 {dimension_numbers = #tpu.dot_dimension_numbers<[1], [0], [0], [1], [0, 0, 1, 1], [], []>} : vector<8x56xf32>, vector<56x8xf32>, vector<8x8xf32> -> vector<8x8xf32>
    %156 = vector.broadcast %153 : vector<1x8xf32> to vector<8x8xf32>
    %157 = arith.addf %155, %156 : vector<8x8xf32>
    %158 = vector.shape_cast %157 : vector<8x8xf32> to vector<1x8x8xf32>
    "tpu.trace_start"() <{level = 10 : i32, message = "gij,gjd->gid"}> : () -> ()
    %cst_50 = arith.constant dense<0.000000e+00> : vector<1x8x8xf32>
    %159 = tpu.matmul %117, %158, %cst_50 {dimension_numbers = #tpu.dot_dimension_numbers<[2], [1], [1], [2], [0, 0, 0, 1, 1, 2], [0], [0]>} : vector<1x8x8xf32>, vector<1x8x8xf32>, vector<1x8x8xf32> -> vector<1x8x8xf32>
    "tpu.trace_stop"() : () -> ()
    %cst_51 = arith.constant 0.000000e+00 : f32
    %160 = vector.broadcast %cst_51 : f32 to vector<1x8x8xf32>
    %161 = arith.maximumf %159, %160 : vector<1x8x8xf32>
    %162 = tpu.concatenate %151, %161 in 2 : vector<1x8x56xf32>, vector<1x8x8xf32> -> vector<1x8x64xf32>
    %163 = vector.shape_cast %162 : vector<1x8x64xf32> to vector<8x64xf32>
    %c0_52 = arith.constant 0 : index
    %c0_53 = arith.constant 0 : index
    %164 = vector.load %arg12[%c0_52, %c0_53] : memref<64x32xf32, #tpu.memory_space<vmem>>, vector<64x32xf32>
    %cst_54 = arith.constant dense<0.000000e+00> : vector<8x32xf32>
    %165 = tpu.matmul %163, %164, %cst_54 {dimension_numbers = #tpu.dot_dimension_numbers<[1], [0], [0], [1], [0, 0, 1, 1], [], []>} : vector<8x64xf32>, vector<64x32xf32>, vector<8x32xf32> -> vector<8x32xf32>
    %c0_55 = arith.constant 0 : index
    %c0_56 = arith.constant 0 : index
    %166 = vector.load %arg13[%c0_55, %c0_56] : memref<1x32xf32, #tpu.memory_space<vmem>>, vector<1x32xf32>
    %167 = vector.broadcast %166 : vector<1x32xf32> to vector<8x32xf32>
    %168 = arith.addf %165, %167 : vector<8x32xf32>
    %169 = vector.shape_cast %168 : vector<8x32xf32> to vector<1x8x32xf32>
    %c0_57 = arith.constant 0 : index
    %c0_58 = arith.constant 0 : index
    %c0_59 = arith.constant 0 : index
    %170 = vector.load %arg14[%c0_57, %c0_58, %c0_59] : memref<1x8x32xf32, #tpu.memory_space<vmem>>, vector<1x8x32xf32>
    tpu.vector_store %arg14[%c0_57, %c0_58, %c0_59], %169 {strides = array<i32>} : memref<1x8x32xf32, #tpu.memory_space<vmem>>, vector<1x8x32xf32>,
    return
  }
  func.func @transform_0(%arg0: i32) -> i32 {
    %c0_i32 = arith.constant 0 : i32
    %c0_i32_0 = arith.constant 0 : i32
    return %c0_i32 : i32
  }
  func.func @transform_1(%arg0: i32) -> (i32, i32, i32) {
    %c0_i32 = arith.constant 0 : i32
    %c0_i32_0 = arith.constant 0 : i32
    %c0_i32_1 = arith.constant 0 : i32
    return %arg0, %c0_i32, %c0_i32_0 : i32, i32, i32
  }
  func.func @transform_2(%arg0: i32) -> (i32, i32, i32) {
    %c0_i32 = arith.constant 0 : i32
    %c0_i32_0 = arith.constant 0 : i32
    %c0_i32_1 = arith.constant 0 : i32
    return %arg0, %c0_i32, %c0_i32_0 : i32, i32, i32
  }
  func.func @transform_3(%arg0: i32) -> (i32, i32) {
    %c0_i32 = arith.constant 0 : i32
    %c0_i32_0 = arith.constant 0 : i32
    %c0_i32_1 = arith.constant 0 : i32
    return %c0_i32, %c0_i32_0 : i32, i32
  }
  func.func @transform_4(%arg0: i32) -> (i32, i32) {
    %c0_i32 = arith.constant 0 : i32
    %c0_i32_0 = arith.constant 0 : i32
    %c0_i32_1 = arith.constant 0 : i32
    return %c0_i32, %c0_i32_0 : i32, i32
  }
  func.func @transform_5(%arg0: i32) -> (i32, i32) {
    %c0_i32 = arith.constant 0 : i32
    %c0_i32_0 = arith.constant 0 : i32
    %c0_i32_1 = arith.constant 0 : i32
    return %c0_i32, %c0_i32_0 : i32, i32
  }
  func.func @transform_6(%arg0: i32) -> (i32, i32) {
    %c0_i32 = arith.constant 0 : i32
    %c0_i32_0 = arith.constant 0 : i32
    %c0_i32_1 = arith.constant 0 : i32
    return %c0_i32, %c0_i32_0 : i32, i32
  }
  func.func @transform_7(%arg0: i32) -> (i32, i32) {
    %c0_i32 = arith.constant 0 : i32
    %c0_i32_0 = arith.constant 0 : i32
    %c0_i32_1 = arith.constant 0 : i32
    return %c0_i32, %c0_i32_0 : i32, i32
  }
  func.func @transform_8(%arg0: i32) -> (i32, i32) {
    %c0_i32 = arith.constant 0 : i32
    %c0_i32_0 = arith.constant 0 : i32
    %c0_i32_1 = arith.constant 0 : i32
    return %c0_i32, %c0_i32_0 : i32, i32
  }
  func.func @transform_9(%arg0: i32) -> (i32, i32) {
    %c0_i32 = arith.constant 0 : i32
    %c0_i32_0 = arith.constant 0 : i32
    %c0_i32_1 = arith.constant 0 : i32
    return %c0_i32, %c0_i32_0 : i32, i32
  }
  func.func @transform_10(%arg0: i32) -> (i32, i32) {
    %c0_i32 = arith.constant 0 : i32
    %c0_i32_0 = arith.constant 0 : i32
    %c0_i32_1 = arith.constant 0 : i32
    return %c0_i32, %c0_i32_0 : i32, i32
  }
  func.func @transform_11(%arg0: i32) -> (i32, i32) {
    %c0_i32 = arith.constant 0 : i32
    %c0_i32_0 = arith.constant 0 : i32
    %c0_i32_1 = arith.constant 0 : i32
    return %c0_i32, %c0_i32_0 : i32, i32
  }
  func.func @transform_12(%arg0: i32) -> (i32, i32) {
    %c0_i32 = arith.constant 0 : i32
    %c0_i32_0 = arith.constant 0 : i32
    %c0_i32_1 = arith.constant 0 : i32
    return %c0_i32, %c0_i32_0 : i32, i32
  }
  func.func @transform_13(%arg0: i32) -> (i32, i32, i32) {
    %c0_i32 = arith.constant 0 : i32
    %c0_i32_0 = arith.constant 0 : i32
    %c0_i32_1 = arith.constant 0 : i32
    return %arg0, %c0_i32, %c0_i32_0 : i32, i32, i32
  }
}

</mosaic_0001>

<bundles_post_ra>
// kernel: tpu_custom_call.1
= control target key start
LH: loop header
LB: loop body
LE: loop exit
PB: predicated region body
PF: predicated region fallthrough
CT: control target
= control target key end

     0   :  { %s2935_s0 = inlined_call_operand.vmem [shape: f32[11], index: 0, kind: input, shape index: {}]   ;;  %s2936_s1 = inlined_call_operand.vmem [shape: f32[2,8,32], index: 1, kind: input, shape index: {}]   ;;  %s2937_s2 = inlined_call_operand.vmem [shape: f32[2,8,8], index: 2, kind: input, shape index: {}]   ;;  %s2938_s3 = inlined_call_operand.vmem [shape: f32[32,8], index: 3, kind: input, shape index: {}]   ;;  %s2939_s4 = inlined_call_operand.vmem [shape: f32[1,8], index: 4, kind: input, shape index: {}]   ;;  %s2940_s5 = inlined_call_operand.vmem [shape: f32[40,8], index: 5, kind: input, shape index: {}]   ;;  %s2941_s6 = inlined_call_operand.vmem [shape: f32[1,8], index: 6, kind: input, shape index: {}]   ;;  %s2942_s7 = inlined_call_operand.vmem [shape: f32[48,8], index: 7, kind: input, shape index: {}]   ;;  %s2943_s8 = inlined_call_operand.vmem [shape: f32[1,8], index: 8, kind: input, shape index: {}]   ;;  %s2944_s9 = inlined_call_operand.vmem [shape: f32[56,8], index: 9, kind: input, shape index: {}]   ;;  %s2945_s10 = inlined_call_operand.vmem [shape: f32[1,8], index: 10, kind: input, shape index: {}]   ;;  %s2946_s11 = inlined_call_operand.vmem [shape: f32[64,32], index: 11, kind: input, shape index: {}]   ;;  %s2947_s12 = inlined_call_operand.vmem [shape: f32[1,32], index: 12, kind: input, shape index: {}]   ;;  %s2948_s13 = inlined_call_operand.hbm [shape: f32[2,8,32], index: 13, kind: output, shape index: {}]  }
   0x1   :  { %2952 = sst [smem:[#allocation9_spill]] %s2935_s0 }
   0x2   :  { %2953 = sst [smem:[#allocation10_spill]] %s2936_s1 }
   0x3   :  { %2954 = sst [smem:[#allocation11_spill]] %s2937_s2 }
   0x4   :  { %18 = vsyncpa [#allocation4], 0 }
   0x5   :  { %19 = vsyncpa [#allocation3], 0 }
   0x6   :  { %21 = vsyncpa [#allocation3 + $0x1], 0  ;;  %s2561_s25 = smov 0   ;;  %s2563_s26 = smov 0  }
   0x7   :  { %s2565_s27 = smov 0   ;;  %s2567_s28 = smov 0  }
   0x8 LB: > { %s2582_s29 = sadd.s32 4294967295, %s2479_s28   ;;  %s2094_s30 = sadd.s32 4294967294, %s2479_s28   ;;  %s2479_s28 = sphi %s2567_s28, %s2969_s28   ;;  %s2475_s27 = sphi %s2565_s27, %s2968_s27   ;;  %s2471_s26 = sphi %s2563_s26, %s2967_s26   ;;  %s2467_s25 = sphi %s2561_s25, %s2966_s25  }
   0x9   : > { %s2586_s14 = sadd.s32 1, %s2479_s28   ;;  %s317_s15 = sadd.s32 1, %s2475_s27 }
   0xa   : > { %s314_s16 = ssub.s32 %s2479_s28, %s2586_s14  ;;  %p327_p0 = scmp.ne.s32.totalorder %s2475_s27, %s2471_s26 }
   0xb   : > { %p315_p1 = scmp.eq.s32.totalorder %s314_s16, 0  ;;  %p328_p2 = scmp.eq.s32.totalorder %s2582_s29, 1 }
   0xc   : > { %p333_p3 = scmp.ne.s32.totalorder %s2471_s26, %s2467_s25  ;;  %p334_p4 = scmp.eq.s32.totalorder %s2094_s30, 1 }
   0xd   : > { %s2597_s17 = scalar_select %p315_p1, %s2475_s27, %s317_s15  }
   0xe   : > { %p2599_p5 = por %p328_p2, %p327_p0  ;;  %p2603_p6 = por %p334_p4, %p333_p3 }
   0xf   : > { %2955 = sst [smem:[#allocation8_spill]] %s2597_s17  ;;  %p2095_p7 = scmp.ge.s32.totalorder %s2479_s28, 1 }
  0x10   : > { %p341_p8 = scmp.lt.s32.totalorder %s2479_s28, 3  ;;  %p2356_p9 = scmp.eq.s32.totalorder %s2582_s29, 0 }
  0x11   : > { %s2959_s0 = sld [smem:[#allocation9_spill]] }
  0x12   : > { %p2610_p10 = pnand %p2095_p7, %p341_p8 }
  0x14   : > { %p2348_p11 = pneg %p2610_p10 }
  0x16   : > { %p2349_p12 = pnand %p2356_p9, %p2348_p11 }
  0x17   : > { %s354_s23 = sshll.u32 %s2959_s0, 4  ;;  %s355_s23 = int_to_ptr.vmem [resolvable:$true] %s354_s23 }
  0x18   : > { %s2400_s24 = scalar_lea.vmem %s355_s23, 16  ;;  %p2402_p0 = pneg %p2349_p12 }
  0x19   : > { %p2401_p13 = scmp.ne.s32.totalorder %s355_s23, %s2400_s24  ;;  %p2408_p3 = scmp.lt.s32.totalorder %s355_s23, %s355_s23 }
  0x1a   : > { %p2409_p4 = scmp.lt.s32.totalorder %s2400_s24, %s2400_s24 }
  0x1b   : > { %p2403_p1 = pnand %p2402_p0, %p2401_p13 }
  0x1c   : > { %p2410_p7 = por %p2409_p4, %p2408_p3 }
  0x1d   : > { %p2404_p2 = pneg %p2403_p1 }
  0x1f   : > { %p2411_p8 = pnand %p2410_p7, %p2404_p2 }
  0x21   : > { %2414 = shalt.err (!%p2411_p8)
}
  0x22   : > { %s2481_s30 = smov [#allocation2]   ;;  %411 = sbr.rel (%p2610_p10) target bundleno = 5939 (0x1733), region = 72 }
  0x23   : > { %2351 = dma.vmem_to_smem (!%p2349_p12), %s355_s23, 16, %s2481_s30, [#allocation4]  }
  0x27   : > { %2458 = dma.done.wait (%p2356_p9), [#allocation4], 16  }
  0x28   : > { %2460 = vsyncadd (%p2356_p9), [#allocation4], 4294967280 }
  0x29   : > { %417 = sfence }
  0x2a   : > { %p459_p11 = scmp.lt.s32.totalorder %s2582_s29, 1  ;;  %v468_v0 = vlaneseq  ;;  %v2482_v1 = vmov 0.0   ;;  %vm2483_vm0 = vmmov 0   ;;  %s2960_s2 = sld [smem:[#allocation11_spill]]  ;;  %vm488_vm2 = vcmask 64512  }
  0x2b   : > { %2202 = vmatprep.subr.mxu0 %v2482_v1  ;;  %2204 = vmatprep.mubr.msk.f32.mxu0 %vm2483_vm0, %v2482_v1  ;;  %s2949_s23 = smov 8   ;;  %s2104_s24 = sld [smem:[#allocation2 + $0xa]]  ;;  %vm1265_vm3 = vcmask 261120   ;;  %vm1430_vm4 = vcmask 326656   ;;  %vm1593_vm5 = vcmask 392192   ;;  %vm1757_vm6 = vcmask 457728  }
  0x2c   : > { %s2632_s15 = scalar_select %p459_p11, %s2582_s29, 1  ;;  %v469_v2 = vshrl.u32 %v468_v0, 7  ;;  %v471_v3 = vand.u32 127, %v468_v0  ;;  %2217 = vmatprep.subr.mxu1 %v2482_v1  ;;  %2219 = vmatprep.mubr.msk.f32.mxu1 %vm2483_vm0, %v2482_v1  ;;  %vm1922_vm7 = vcmask 523264  }
  0x2d   : > { %s2105_s30 = sld [smem:[#allocation2 + $0x9]]  ;;  %s2951_s20 = smov 120  }
  0x2e   : > { %s2950_s16 = sshll.u32 %s2632_s15, 3  ;;  %vm472_vm1 = vcmp.eq.s32.totalorder %v469_v2, %v471_v3  ;;  %s2107_s21 = sld [smem:[#allocation2 + $0x8]] }
  0x2f   : > { %v2103_v4 = vsel %vm472_vm1, 1.0, %v2482_v1  ;;  %s2961_s0 = sshll.u32 %s2632_s15, 3  ;;  %s2962_s1 = sld [smem:[#allocation10_spill]] }
  0x30   : > { %s466_s22 = scalar_lea.vmem %s2960_s2, %s2950_s16  ;;  %v475_v6 = vmul.f32 2.0, %v2103_v4  ;;  %s2121_s2 = sld [smem:[#allocation2 + $0x1]] }
  0x31   : > { %v2644_v5 = vld [vmem:[%s466_s22] sm:$0xff]  ;;  %v478_v8 = vstv %s2104_s24  ;;  %s2109_s22 = sld [smem:[#allocation2 + $0x7]]  ;;  %s2964_s16 = smov 120  }
  0x32   : > { %v476_v7 = vsub.f32 %v475_v6, %v2644_v5  ;;  %v479_v10 = vmul.f32 %v478_v8, %v2644_v5  ;;  %s2111_s24 = sld [smem:[#allocation2 + $0x6]]  ;;  %s456_s17 = sand.u32 1, %s2471_s26  }
  0x33   : > { %v481_v9 = vstv %s2105_s30  ;;  %s2113_s30 = sld [smem:[#allocation2 + $0x5]]  ;;  %s2100_s15 = sshll.u32 %s456_s17, 3 }
  0x34   : > { %485 = vrot.lane.b32.xlu0 %v476_v7, %s2949_s23  ;;  %v482_v11 = vmul.f32 %v481_v9, %v476_v7  ;;  %v563_v17 = vmul.f32 2.0, %v476_v7  ;;  %v570_v20 = vstv %s2107_s21  ;;  %s2115_s21 = sld [smem:[#allocation2 + $0x4]] }
  0x36   : > { %v483_v12 = vadd.f32 %v482_v11, %v479_v10 }
  0x37   : > { %v655_v30 = vstv %s2109_s22  ;;  %s2117_s22 = sld [smem:[#allocation2 + $0x3]] }
  0x38   : > { %v740_v40 = vstv %s2111_s24  ;;  %s2119_s24 = sld [smem:[#allocation2 + $0x2]] }
  0x39   : > { %v825_v50 = vstv %s2113_s30  ;;  %s2487_s30 = smov 40  }
  0x3a   : > { %v910_v60 = vstv %s2115_s21 }
  0x3d   : > { %v995_v8 = vstv %s2117_s22  ;;  %s458_s22 = scalar_lea.vmem [#allocation5], %s2100_s15 }
  0xa6   : > { %v486_v13 = vpop.permute.xlu0 %485 }
  0xa7   : > { %v489_v14 = vsel %vm488_vm2, %v483_v12, %v486_v13 }
  0xa8   : > { %2203 = vmatpush3.msra.mxu0 %v489_v14 }
  0xa9   : > { %2205 = vmatmul.mubr.msk.f32.vlgmr.msra.gmra.mxu0 %vm488_vm2, %v2644_v5  ;;  %2207 = vmatprep.subr.mxu0 %v2482_v1 }
  0xaa   : > { %2209 = vmatprep.mubr.msk.f32.mxu0 %vm2483_vm0, %v2482_v1 }
 0x169   : > { %v559_v15 = vpop.f32.mrf.mxu0 }
 0x16a   : > { %565 = vrot.lane.b32.xlu0 %v559_v15, %s2951_s20 }
 0x16b   : > { %v2206_v16 = vpop.f32.mrf.mxu0 }
 0x1dc   : > { %v566_v18 = vpop.permute.xlu0 %565 }
 0x1dd   : > { %v568_v19 = vsub.f32 %v563_v17, %v566_v18  ;;  %v1080_v18 = vstv %s2119_s24  ;;  %s2011_s24 = sshll.u32 %s458_s22, 4  ;;  %s2012_s24 = int_to_ptr.vmem [resolvable:$true] %s2011_s24 }
 0x1df   : > { %574 = vrot.lane.b32.xlu1 %v568_v19, %s2949_s23  ;;  %v571_v21 = vmul.f32 %v570_v20, %v568_v19  ;;  %v648_v27 = vmul.f32 2.0, %v568_v19 }
 0x1e1   : > { %v572_v22 = vadd.f32 %v571_v21, %v559_v15 }
 0x251   : > { %v575_v23 = vpop.permute.xlu1 %574 }
 0x252   : > { %v577_v24 = vsel %vm488_vm2, %v572_v22, %v575_v23 }
 0x253   : > { %2208 = vmatpush3.msra.mxu0 %v577_v24 }
 0x254   : > { %2210 = vmatmul.mubr.msk.f32.vlgmr.msra.gmra.mxu0 %vm488_vm2, %v2644_v5  ;;  %2212 = vmatprep.subr.mxu0 %v2482_v1 }
 0x255   : > { %2214 = vmatprep.mubr.msk.f32.mxu0 %vm2483_vm0, %v2482_v1 }
 0x314   : > { %v644_v25 = vpop.f32.mrf.mxu0 }
 0x315   : > { %650 = vrot.lane.b32.xlu1 %v644_v25, %s2951_s20 }
 0x316   : > { %v2211_v26 = vpop.f32.mrf.mxu0 }
 0x317   : > { %v1256_v26 = vld [vmem:[%s2938_s3 + $0x10] sm:$0xff] }
 0x387   : > { %v651_v28 = vpop.permute.xlu1 %650 }
 0x388   : > { %v653_v29 = vsub.f32 %v648_v27, %v651_v28  ;;  %v1255_v27 = vld [vmem:[%s2938_s3 + $0x8] sm:$0xff]  ;;  %v1254_v28 = vld [vmem:[%s2938_s3] sm:$0xff] }
 0x38a   : > { %659 = vrot.lane.b32.xlu0 %v653_v29, %s2949_s23  ;;  %v656_v31 = vmul.f32 %v655_v30, %v653_v29  ;;  %v733_v37 = vmul.f32 2.0, %v653_v29 }
 0x38c   : > { %v657_v32 = vadd.f32 %v656_v31, %v644_v25  ;;  %v1257_v25 = vld [vmem:[%s2938_s3 + $0x18] sm:$0xff] }
 0x3fc   : > { %v660_v33 = vpop.permute.xlu0 %659 }
 0x3fd   : > { %v662_v34 = vsel %vm488_vm2, %v657_v32, %v660_v33  ;;  %v1165_v33 = vstv %s2121_s2  ;;  %s2489_s2 = smov 56  }
 0x3fe   : > { %2213 = vmatpush3.msra.mxu0 %v662_v34 }
 0x3ff   : > { %2215 = vmatmul.mubr.msk.f32.vlgmr.msra.gmra.mxu0 %vm488_vm2, %v2644_v5  ;;  %2222 = vmatprep.subr.mxu0 %v2482_v1 }
 0x400   : > { %2224 = vmatprep.mubr.msk.f32.mxu0 %vm2483_vm0, %v2482_v1 }
 0x4bf   : > { %v729_v35 = vpop.f32.mrf.mxu0 }
 0x4c0   : > { %735 = vrot.lane.b32.xlu1 %v729_v35, %s2951_s20 }
 0x4c1   : > { %v2216_v36 = vpop.f32.mrf.mxu0 }
 0x532   : > { %v736_v38 = vpop.permute.xlu1 %735 }
 0x533   : > { %v738_v39 = vsub.f32 %v733_v37, %v736_v38 }
 0x535   : > { %744 = vrot.lane.b32.xlu0 %v738_v39, %s2949_s23  ;;  %v741_v41 = vmul.f32 %v740_v40, %v738_v39  ;;  %v818_v47 = vmul.f32 2.0, %v738_v39  ;;  %v2123_v39 = vld [vmem:[%s2939_s4] ss:$0 sm:$0xff] }
 0x537   : > { %v742_v42 = vadd.f32 %v741_v41, %v729_v35 }
 0x5a7   : > { %v745_v43 = vpop.permute.xlu0 %744 }
 0x5a8   : > { %v747_v44 = vsel %vm488_vm2, %v742_v42, %v745_v43 }
 0x5a9   : > { %2218 = vmatpush3.msra.mxu1 %v747_v44 }
 0x5aa   : > { %2220 = vmatmul.mubr.msk.f32.vlgmr.msra.gmra.mxu1 %vm488_vm2, %v2644_v5  ;;  %2227 = vmatprep.subr.mxu1 %v2482_v1 }
 0x5ab   : > { %2229 = vmatprep.mubr.msk.f32.mxu1 %vm2483_vm0, %v2482_v1 }
 0x66a   : > { %v814_v45 = vpop.f32.mrf.mxu1 }
 0x66b   : > { %820 = vrot.lane.b32.xlu1 %v814_v45, %s2951_s20 }
 0x66c   : > { %v2221_v46 = vpop.f32.mrf.mxu1 }
 0x6dd   : > { %v821_v48 = vpop.permute.xlu1 %820 }
 0x6de   : > { %v823_v49 = vsub.f32 %v818_v47, %v821_v48 }
 0x6e0   : > { %829 = vrot.lane.b32.xlu0 %v823_v49, %s2949_s23  ;;  %v826_v51 = vmul.f32 %v825_v50, %v823_v49  ;;  %v903_v57 = vmul.f32 2.0, %v823_v49  ;;  %v1422_v49 = vld [vmem:[%s2940_s5 + $0x20] sm:$0xff]  ;;  %v1421_v50 = vld [vmem:[%s2940_s5 + $0x18] sm:$0xff] }
 0x6e2   : > { %v827_v52 = vadd.f32 %v826_v51, %v814_v45  ;;  %v1420_v51 = vld [vmem:[%s2940_s5 + $0x10] sm:$0xff] }
 0x752   : > { %v830_v53 = vpop.permute.xlu0 %829 }
 0x753   : > { %v832_v54 = vsel %vm488_vm2, %v827_v52, %v830_v53  ;;  %v1419_v52 = vld [vmem:[%s2940_s5 + $0x8] sm:$0xff]  ;;  %v1418_v53 = vld [vmem:[%s2940_s5] sm:$0xff] }
 0x754   : > { %2223 = vmatpush3.msra.mxu0 %v832_v54 }
 0x755   : > { %2225 = vmatmul.mubr.msk.f32.vlgmr.msra.gmra.mxu0 %vm488_vm2, %v2644_v5  ;;  %2232 = vmatprep.subr.mxu0 %v2482_v1 }
 0x756   : > { %2234 = vmatprep.mubr.msk.f32.mxu0 %vm2483_vm0, %v2482_v1 }
 0x815   : > { %v899_v55 = vpop.f32.mrf.mxu0 }
 0x816   : > { %905 = vrot.lane.b32.xlu1 %v899_v55, %s2951_s20 }
 0x817   : > { %v2226_v56 = vpop.f32.mrf.mxu0 }
 0x888   : > { %v906_v58 = vpop.permute.xlu1 %905 }
 0x889   : > { %v908_v59 = vsub.f32 %v903_v57, %v906_v58 }
 0x88b   : > { %914 = vrot.lane.b32.xlu0 %v908_v59, %s2949_s23  ;;  %v911_v61 = vmul.f32 %v910_v60, %v908_v59  ;;  %v988_v4 = vmul.f32 2.0, %v908_v59  ;;  %v2126_v59 = vld [vmem:[%s2941_s6] ss:$0 sm:$0xff] }
 0x88d   : > { %v912_v62 = vadd.f32 %v911_v61, %v899_v55 }
 0x8fd   : > { %v915_v63 = vpop.permute.xlu0 %914 }
 0x8fe   : > { %v917_v0 = vsel %vm488_vm2, %v912_v62, %v915_v63  ;;  %v1585_v63 = vld [vmem:[%s2942_s7 + $0x28] sm:$0xff] }
 0x8ff   : > { %2228 = vmatpush3.msra.mxu1 %v917_v0  ;;  %v1584_v0 = vld [vmem:[%s2942_s7 + $0x20] sm:$0xff] }
 0x900   : > { %2230 = vmatmul.mubr.msk.f32.vlgmr.msra.gmra.mxu1 %vm488_vm2, %v2644_v5  ;;  %2237 = vmatprep.subr.mxu1 %v2482_v1 }
 0x901   : > { %2239 = vmatprep.mubr.msk.f32.mxu1 %vm2483_vm0, %v2482_v1 }
 0x9c0   : > { %v984_v2 = vpop.f32.mrf.mxu1 }
 0x9c1   : > { %990 = vrot.lane.b32.xlu1 %v984_v2, %s2951_s20 }
 0x9c2   : > { %v2231_v3 = vpop.f32.mrf.mxu1 }
 0x9c3   : > { %v1582_v3 = vld [vmem:[%s2942_s7 + $0x10] sm:$0xff] }
 0xa33   : > { %v991_v6 = vpop.permute.xlu1 %990 }
 0xa34   : > { %v993_v7 = vsub.f32 %v988_v4, %v991_v6  ;;  %v1581_v4 = vld [vmem:[%s2942_s7 + $0x8] sm:$0xff]  ;;  %v1580_v6 = vld [vmem:[%s2942_s7] sm:$0xff] }
 0xa36   : > { %999 = vrot.lane.b32.xlu0 %v993_v7, %s2949_s23  ;;  %v996_v9 = vmul.f32 %v995_v8, %v993_v7  ;;  %v1073_v15 = vmul.f32 2.0, %v993_v7 }
 0xa38   : > { %v997_v10 = vadd.f32 %v996_v9, %v984_v2  ;;  %v1583_v2 = vld [vmem:[%s2942_s7 + $0x18] sm:$0xff] }
 0xaa8   : > { %v1000_v11 = vpop.permute.xlu0 %999 }
 0xaa9   : > { %v1002_v12 = vsel %vm488_vm2, %v997_v10, %v1000_v11 }
 0xaaa   : > { %2233 = vmatpush3.msra.mxu0 %v1002_v12  ;;  %v2129_v12 = vld [vmem:[%s2943_s8] ss:$0 sm:$0xff] }
 0xaab   : > { %2235 = vmatmul.mubr.msk.f32.vlgmr.msra.gmra.mxu0 %vm488_vm2, %v2644_v5  ;;  %2242 = vmatprep.subr.mxu0 %v2482_v1 }
 0xaac   : > { %2244 = vmatprep.mubr.msk.f32.mxu0 %vm2483_vm0, %v2482_v1 }
 0xb6b   : > { %v1069_v13 = vpop.f32.mrf.mxu0 }
 0xb6c   : > { %1075 = vrot.lane.b32.xlu1 %v1069_v13, %s2951_s20 }
 0xb6d   : > { %v2236_v14 = vpop.f32.mrf.mxu0 }
 0xbde   : > { %v1076_v16 = vpop.permute.xlu1 %1075 }
 0xbdf   : > { %v1078_v17 = vsub.f32 %v1073_v15, %v1076_v16  ;;  %v1749_v16 = vld [vmem:[%s2944_s9 + $0x30] sm:$0xff] }
 0xbe1   : > { %1084 = vrot.lane.b32.xlu0 %v1078_v17, %s2949_s23  ;;  %v1081_v19 = vmul.f32 %v1080_v18, %v1078_v17  ;;  %v1158_v30 = vmul.f32 2.0, %v1078_v17  ;;  %s1249_s23 = sld [smem:[#allocation2]]  ;;  %v1748_v17 = vld [vmem:[%s2944_s9 + $0x28] sm:$0xff]  ;;  %v1747_v18 = vld [vmem:[%s2944_s9 + $0x20] sm:$0xff] }
 0xbe3   : > { %v1082_v20 = vadd.f32 %v1081_v19, %v1069_v13  ;;  %v1746_v19 = vld [vmem:[%s2944_s9 + $0x18] sm:$0xff] }
 0xbe7   : > { %v1250_v44 = vstv %s1249_s23  ;;  %s2486_s23 = smov 32  }
 0xc53   : > { %v1085_v21 = vpop.permute.xlu0 %1084 }
 0xc54   : > { %v1087_v22 = vsel %vm488_vm2, %v1082_v20, %v1085_v21  ;;  %v1745_v20 = vld [vmem:[%s2944_s9 + $0x10] sm:$0xff]  ;;  %v1744_v21 = vld [vmem:[%s2944_s9 + $0x8] sm:$0xff] }
 0xc55   : > { %2238 = vmatpush3.msra.mxu1 %v1087_v22  ;;  %v1743_v22 = vld [vmem:[%s2944_s9] sm:$0xff] }
 0xc56   : > { %2240 = vmatmul.mubr.msk.f32.vlgmr.msra.gmra.mxu1 %vm488_vm2, %v2644_v5  ;;  %2247 = vmatprep.subr.mxu1 %v2482_v1 }
 0xc57   : > { %2255 = vmatprep.mubr.msk.f32.mxu1 %vm2483_vm0, %v2482_v1  ;;  %2248 = vmatpush3.msra.mxu1 %v1257_v25 }
 0xc58   : > { %2249 = vmatprep.subr.mxu1 %v2482_v1 }
 0xc59   : > { %2250 = vmatpush3.msra.mxu1 %v1256_v26 }
 0xc5a   : > { %2251 = vmatprep.subr.mxu1 %v2482_v1 }
 0xc5b   : > { %2252 = vmatpush3.msra.mxu1 %v1255_v27 }
 0xc5c   : > { %2253 = vmatprep.subr.mxu1 %v2482_v1 }
 0xc5d   : > { %2254 = vmatpush3.msra.mxu1 %v1254_v28  ;;  %v2132_v28 = vld [vmem:[%s2945_s10] ss:$0 sm:$0xff] }
 0xc5e   : > { %2276 = vmatprep.subr.mxu1 %v2482_v1 }
 0xd16   : > { %v1154_v23 = vpop.f32.mrf.mxu1 }
 0xd17   : > { %1160 = vrot.lane.b32.xlu1 %v1154_v23, %s2951_s20  ;;  %s462_s20 = scalar_lea.vmem %s2962_s1, %s2961_s0  ;;  %s2963_s0 = smov 8  }
 0xd18   : > { %v2241_v24 = vpop.f32.mrf.mxu1  ;;  %v1253_v29 = vld [vmem:[%s462_s20] sm:$0xff]  ;;  %s2138_s20 = sshll.u32 %s2582_s29, 7  ;;  %s2415_s1 = scalar_lea.vmem %s2012_s24, 128 }
 0xd19   : > { %2256 = vmatmul.mubr.msk.f32.vlgmr.msra.gmra.mxu1 %vm1265_vm3, %v1253_v29  ;;  %p2416_p9 = scmp.ne.s32.totalorder %s2012_s24, %s2415_s1  ;;  %s2490_s29 = smov [#allocation5]  }
 0xd1a   : > { %2278 = vmatprep.mubr.msk.f32.mxu1 %vm2483_vm0, %v2482_v1  ;;  %s2419_s15 = sshll.u32 %s2490_s29, 4  ;;  %s2420_s15 = int_to_ptr.vmem [resolvable:$false] %s2419_s15 }
 0xd1b   : > { %p2417_p10 = pnand %p2416_p9, %p2599_p5  ;;  %p2422_p13 = scmp.lt.s32.totalorder %s2012_s24, %s2420_s15 }
 0xd1d   : > { %p2418_p12 = pneg %p2417_p10 }
 0xd89   : > { %v1161_v31 = vpop.permute.xlu1 %1160 }
 0xd8a   : > { %v1163_v32 = vsub.f32 %v1158_v30, %v1161_v31 }
 0xd8c   : > { %1169 = vrot.lane.b32.xlu0 %v1163_v32, %s2963_s0  ;;  %v1166_v34 = vmul.f32 %v1165_v33, %v1163_v32  ;;  %v1913_v33 = vld [vmem:[%s2946_s11 + $0x30] sm:$0xff]  ;;  %s2899_s0 = scalar_lea.hbm %s2948_s13, %s2138_s20 }
 0xd8e   : > { %v1167_v35 = vadd.f32 %v1166_v34, %v1154_v23  ;;  %v1912_v34 = vld [vmem:[%s2946_s11 + $0x28] sm:$0xff] }
 0xdd9   : > { %v1335_v38 = vpop.f32.mrf.mxu1 }
 0xdda   : > { %v1336_v41 = vadd.f32 %v2123_v39, %v1335_v38  ;;  %v1908_v38 = vld [vmem:[%s2946_s11 + $0x8] sm:$0xff]  ;;  %v1907_v39 = vld [vmem:[%s2946_s11] sm:$0xff] }
 0xddb   : > { %v2257_v40 = vpop.f32.mrf.mxu1 }
 0xdfe   : > { %v1170_v36 = vpop.permute.xlu0 %1169 }
 0xdff   : > { %v1172_v37 = vsel %vm488_vm2, %v1167_v35, %v1170_v36  ;;  %v1911_v35 = vld [vmem:[%s2946_s11 + $0x20] sm:$0xff]  ;;  %v1910_v36 = vld [vmem:[%s2946_s11 + $0x18] sm:$0xff] }
 0xe00   : > { %2243 = vmatpush3.msra.mxu0 %v1172_v37  ;;  %v1909_v37 = vld [vmem:[%s2946_s11 + $0x10] sm:$0xff] }
 0xe01   : > { %2245 = vmatmul.mubr.msk.f32.vlgmr.msra.gmra.mxu0 %vm488_vm2, %v2644_v5  ;;  %2258 = vmatprep.subr.mxu0 %v2482_v1  ;;  %v1243_v5 = vmul.f32 2.0, %v1163_v32  ;;  %v1914_v32 = vld [vmem:[%s2946_s11 + $0x38] sm:$0xff] }
 0xe02   : > { %2260 = vmatprep.mubr.msk.f32.mxu0 %vm2483_vm0, %v2482_v1  ;;  %2259 = vmatpush3.msra.mxu0 %v1336_v41 }
 0xe03   : > { %2263 = vmatprep.subr.mxu0 %v2482_v1 }
 0xec1   : > { %v1239_v42 = vpop.f32.mrf.mxu0 }
 0xec2   : > { %1245 = vrot.lane.b32.xlu1 %v1239_v42, %s2964_s16  ;;  %s2488_s16 = smov 48  }
 0xec3   : > { %v2246_v43 = vpop.f32.mrf.mxu0 }
 0xf34   : > { %v1246_v45 = vpop.permute.xlu1 %1245 }
 0xf35   : > { %v1248_v46 = vsub.f32 %v1243_v5, %v1246_v45 }
 0xf37   : > { %v1251_v47 = vmul.f32 %v1250_v44, %v1248_v46 }
 0xf39   : > { %v2748_v48 = vadd.f32 %v1251_v47, %v1239_v42 }
 0xf3b   : > { %2261 = vmatmul.mubr.msk.f32.vlgmr.msra.gmra.mxu0 %vm488_vm2, %v2748_v48 }
 0xf3c   : > { %2273 = vmatprep.mubr.msk.f32.mxu0 %vm2483_vm0, %v2482_v1  ;;  %2264 = vmatpush3.msra.mxu0 %v1422_v49 }
 0xf3d   : > { %2265 = vmatprep.subr.mxu0 %v2482_v1 }
 0xf3e   : > { %2266 = vmatpush3.msra.mxu0 %v1421_v50 }
 0xf3f   : > { %2267 = vmatprep.subr.mxu0 %v2482_v1 }
 0xf40   : > { %2268 = vmatpush3.msra.mxu0 %v1420_v51 }
 0xf41   : > { %2269 = vmatprep.subr.mxu0 %v2482_v1 }
 0xf42   : > { %2270 = vmatpush3.msra.mxu0 %v1419_v52 }
 0xf43   : > { %2271 = vmatprep.subr.mxu0 %v2482_v1 }
 0xf44   : > { %2272 = vmatpush3.msra.mxu0 %v1418_v53 }
 0xf45   : > { %2296 = vmatprep.subr.mxu0 %v2482_v1 }
 0xffb   : > { %v1408_v54 = vpop.f32.mrf.mxu0 }
 0xffc   : > { %v1412_v55 = vmax.f32 %v1408_v54, 0.0 }
 0xffd   : > { %v2262_v56 = vpop.f32.mrf.mxu0 }
 0xffe   : > { %1414 = vrot.lane.b32.xlu0 %v1412_v55, %s2486_s23 }
0x1070   : > { %v1415_v57 = vpop.permute.xlu0 %1414 }
0x1071   : > { %v1417_v58 = vsel %vm1265_vm3, %v1253_v29, %v1415_v57 }
0x1072   : > { %2274 = vmatmul.mubr.msk.f32.vlgmr.msra.gmra.mxu0 %vm1430_vm4, %v1417_v58 }
0x1073   : > { %2298 = vmatprep.mubr.msk.f32.mxu0 %vm2483_vm0, %v2482_v1 }
0x1132   : > { %v1500_v60 = vpop.f32.mrf.mxu0 }
0x1133   : > { %v1501_v61 = vadd.f32 %v2126_v59, %v1500_v60 }
0x1134   : > { %v2275_v62 = vpop.f32.mrf.mxu0 }
0x1135   : > { %2277 = vmatpush3.msra.mxu1 %v1501_v61 }
0x1136   : > { %2279 = vmatmul.mubr.msk.f32.vlgmr.msra.gmra.mxu1 %vm488_vm2, %v2748_v48  ;;  %2281 = vmatprep.subr.mxu1 %v2482_v1 }
0x1137   : > { %2293 = vmatprep.mubr.msk.f32.mxu1 %vm2483_vm0, %v2482_v1  ;;  %2282 = vmatpush3.msra.mxu1 %v1585_v63 }
0x1138   : > { %2283 = vmatprep.subr.mxu1 %v2482_v1 }
0x1139   : > { %2284 = vmatpush3.msra.mxu1 %v1584_v0 }
0x113a   : > { %2285 = vmatprep.subr.mxu1 %v2482_v1 }
0x113b   : > { %2286 = vmatpush3.msra.mxu1 %v1583_v2 }
0x113c   : > { %2287 = vmatprep.subr.mxu1 %v2482_v1 }
0x113d   : > { %2288 = vmatpush3.msra.mxu1 %v1582_v3 }
0x113e   : > { %2289 = vmatprep.subr.mxu1 %v2482_v1 }
0x113f   : > { %2290 = vmatpush3.msra.mxu1 %v1581_v4 }
0x1140   : > { %2291 = vmatprep.subr.mxu1 %v2482_v1 }
0x1141   : > { %2292 = vmatpush3.msra.mxu1 %v1580_v6 }
0x1142   : > { %2318 = vmatprep.subr.mxu1 %v2482_v1 }
0x11f6   : > { %v1570_v7 = vpop.f32.mrf.mxu1 }
0x11f7   : > { %v1574_v8 = vmax.f32 %v1570_v7, 0.0 }
0x11f8   : > { %v2280_v9 = vpop.f32.mrf.mxu1 }
0x11f9   : > { %1576 = vrot.lane.b32.xlu1 %v1574_v8, %s2487_s30 }
0x126b   : > { %v1577_v10 = vpop.permute.xlu1 %1576 }
0x126c   : > { %v1579_v11 = vsel %vm1430_vm4, %v1417_v58, %v1577_v10 }
0x126d   : > { %2294 = vmatmul.mubr.msk.f32.vlgmr.msra.gmra.mxu1 %vm1593_vm5, %v1579_v11 }
0x126e   : > { %2320 = vmatprep.mubr.msk.f32.mxu1 %vm2483_vm0, %v2482_v1 }
0x132d   : > { %v1663_v13 = vpop.f32.mrf.mxu1 }
0x132e   : > { %v1664_v14 = vadd.f32 %v2129_v12, %v1663_v13 }
0x132f   : > { %v2295_v15 = vpop.f32.mrf.mxu1 }
0x1330   : > { %2297 = vmatpush3.msra.mxu0 %v1664_v14 }
0x1331   : > { %2299 = vmatmul.mubr.msk.f32.vlgmr.msra.gmra.mxu0 %vm488_vm2, %v2748_v48  ;;  %2301 = vmatprep.subr.mxu0 %v2482_v1 }
0x1332   : > { %2315 = vmatprep.mubr.msk.f32.mxu0 %vm2483_vm0, %v2482_v1  ;;  %2302 = vmatpush3.msra.mxu0 %v1749_v16 }
0x1333   : > { %2303 = vmatprep.subr.mxu0 %v2482_v1 }
0x1334   : > { %2304 = vmatpush3.msra.mxu0 %v1748_v17 }
0x1335   : > { %2305 = vmatprep.subr.mxu0 %v2482_v1 }
0x1336   : > { %2306 = vmatpush3.msra.mxu0 %v1747_v18 }
0x1337   : > { %2307 = vmatprep.subr.mxu0 %v2482_v1 }
0x1338   : > { %2308 = vmatpush3.msra.mxu0 %v1746_v19 }
0x1339   : > { %2309 = vmatprep.subr.mxu0 %v2482_v1 }
0x133a   : > { %2310 = vmatpush3.msra.mxu0 %v1745_v20 }
0x133b   : > { %2311 = vmatprep.subr.mxu0 %v2482_v1 }
0x133c   : > { %2312 = vmatpush3.msra.mxu0 %v1744_v21 }
0x133d   : > { %2313 = vmatprep.subr.mxu0 %v2482_v1 }
0x133e   : > { %2314 = vmatpush3.msra.mxu0 %v1743_v22 }
0x13f1   : > { %v1733_v23 = vpop.f32.mrf.mxu0 }
0x13f2   : > { %v1737_v24 = vmax.f32 %v1733_v23, 0.0 }
0x13f3   : > { %v2300_v25 = vpop.f32.mrf.mxu0 }
0x13f4   : > { %1739 = vrot.lane.b32.xlu0 %v1737_v24, %s2488_s16  ;;  %s2421_s16 = scalar_lea.vmem %s2420_s15, 256 }
0x13f5   : > { %p2423_p0 = scmp.lt.s32.totalorder %s2421_s16, %s2415_s1 }
0x13f7   : > { %p2424_p1 = por %p2423_p0, %p2422_p13 }
0x13f9   : > { %p2425_p2 = pnand %p2424_p1, %p2418_p12 }
0x1466   : > { %v1740_v26 = vpop.permute.xlu0 %1739 }
0x1467   : > { %v1742_v27 = vsel %vm1593_vm5, %v1579_v11, %v1740_v26 }
0x1468   : > { %2316 = vmatmul.mubr.msk.f32.vlgmr.msra.gmra.mxu0 %vm1757_vm6, %v1742_v27 }
0x1528   : > { %v1827_v29 = vpop.f32.mrf.mxu0 }
0x1529   : > { %v1828_v30 = vadd.f32 %v2132_v28, %v1827_v29 }
0x152a   : > { %v2317_v31 = vpop.f32.mrf.mxu0 }
0x152b   : > { %2319 = vmatpush3.msra.mxu1 %v1828_v30 }
0x152c   : > { %2321 = vmatmul.mubr.msk.f32.vlgmr.msra.gmra.mxu1 %vm488_vm2, %v2748_v48  ;;  %2323 = vmatprep.subr.mxu1 %v2482_v1 }
0x152d   : > { %2339 = vmatprep.mubr.msk.f32.mxu1 %vm2483_vm0, %v2482_v1  ;;  %2324 = vmatpush3.msra.mxu1 %v1914_v32 }
0x152e   : > { %2325 = vmatprep.subr.mxu1 %v2482_v1 }
0x152f   : > { %2326 = vmatpush3.msra.mxu1 %v1913_v33 }
0x1530   : > { %2327 = vmatprep.subr.mxu1 %v2482_v1 }
0x1531   : > { %2328 = vmatpush3.msra.mxu1 %v1912_v34 }
0x1532   : > { %2329 = vmatprep.subr.mxu1 %v2482_v1 }
0x1533   : > { %2330 = vmatpush3.msra.mxu1 %v1911_v35 }
0x1534   : > { %2331 = vmatprep.subr.mxu1 %v2482_v1 }
0x1535   : > { %2332 = vmatpush3.msra.mxu1 %v1910_v36 }
0x1536   : > { %2333 = vmatprep.subr.mxu1 %v2482_v1 }
0x1537   : > { %2334 = vmatpush3.msra.mxu1 %v1909_v37 }
0x1538   : > { %2335 = vmatprep.subr.mxu1 %v2482_v1 }
0x1539   : > { %2336 = vmatpush3.msra.mxu1 %v1908_v38 }
0x153a   : > { %2337 = vmatprep.subr.mxu1 %v2482_v1  ;;  %v2135_v1 = vld [vmem:[%s2947_s12] ss:$0 sm:$0xff] }
0x153b   : > { %2338 = vmatpush3.msra.mxu1 %v1907_v39 }
0x15ec   : > { %v1897_v40 = vpop.f32.mrf.mxu1 }
0x15ed   : > { %v1901_v41 = vmax.f32 %v1897_v40, 0.0 }
0x15ee   : > { %v2322_v42 = vpop.f32.mrf.mxu1 }
0x15ef   : > { %1903 = vrot.lane.b32.xlu1 %v1901_v41, %s2489_s2  ;;  %s1998_s2 = scalar_lea.sflag [#allocation3], %s456_s17 }
0x1661   : > { %v1904_v43 = vpop.permute.xlu1 %1903 }
0x1662   : > { %v1906_v5 = vsel %vm1757_vm6, %v1742_v27, %v1904_v43 }
0x1663   : > { %2340 = vmatmul.mubr.msk.f32.vlgmr.msra.gmra.mxu1 %vm1922_vm7, %v1906_v5 }
0x1723   : > { %v1992_v44 = vpop.f32.mrf.mxu1 }
0x1724   : > { %v1993_v45 = vadd.f32 %v2135_v1, %v1992_v44 }
0x1725   : > { %v2341_v46 = vpop.f32.mrf.mxu1 }
0x1726   : > { %1996 = vst.msk [vmem:[%s458_s22] sm:$0xff] %vm1265_vm3, %v1993_v45 }
0x1727   : > { %2428 = shalt.err (!%p2425_p2)
}
0x1728   : > { %s2429_s23 = scalar_lea.hbm %s2899_s0, 128  ;;  %s2433_s22 = scalar_lea.hbm %s2948_s13, 256 }
0x1729   : > { %p2430_p3 = scmp.ne.s32.totalorder %s2899_s0, %s2429_s23  ;;  %p2434_p8 = scmp.lt.s32.totalorder %s2899_s0, %s2948_s13 }
0x172a   : > { %p2435_p11 = scmp.lt.s32.totalorder %s2433_s22, %s2429_s23 }
0x172b   : > { %p2431_p4 = pnand %p2430_p3, %p2599_p5 }
0x172c   : > { %p2436_p9 = por %p2435_p11, %p2434_p8 }
0x172d   : > { %p2432_p7 = pneg %p2431_p4 }
0x172f   : > { %p2437_p10 = pnand %p2436_p9, %p2432_p7 }
0x1731   : > { %2440 = shalt.err (!%p2437_p10)
}
0x1732   : > { %2346 = dma.vmem_to_hbm [thread:$0]  (%p2599_p5), %s2012_s24, 128, %s2899_s0, %s1998_s2  }
0x1733 PF: > { %p2358_p12 = scmp.ge.s32.totalorder %s2479_s28, 2  ;;  %s2023_s1 = sand.u32 1, %s2467_s25  }
0x1734   : > { %s2024_s29 = scalar_lea.sflag [#allocation3], %s2023_s1 }
0x1735   : > { %p2353_p13 = pnand %p2358_p12, %p2603_p6 }
0x1737   : > { %p2354_p0 = pneg %p2353_p13 }
0x1739   : > { %2462 = dma.done.wait (%p2354_p0), %s2024_s29, 128  }
0x173a   : > { %2464 = vsyncadd (%p2354_p0), %s2024_s29, 4294967168  ;;  %s2965_s15 = sld [smem:[#allocation8_spill]]  ;;  %p24_p1 = scmp.ge.s32.totalorder %s2586_s14, 4  }
0x173b   : > { %s2966_s25 = smov %s2471_s26  ;;  %s2967_s26 = smov %s2475_s27 }
0x173c   : > { %s2969_s28 = smov %s2586_s14  ;;  %26 = sbr.rel (!%p24_p1) target bundleno = 8 (0x8), region = 115 }
0x1740   : > { %s2968_s27 = smov %s2965_s15 }
0x1741   :  { %2029 = vsyncpa [#allocation3], 1 }
0x1742   :  { %2031 = vsyncpa [#allocation3 + $0x1], 1 }
0x1743   :  { %2032 = vsyncpa [#allocation4], 1 }
0x1744   :  { %2034 = vsyncpa [#allocation4 + $0x1], 1 }

</bundles_post_ra>
